<compile_context>
chip_gen: v6e
topology: v6e:2x2x1
jax: 0.10.0
libtpu: 0.0.40
codegen_flags: <defaults>
</compile_context>

<pallas_src>
import jax
import jax.numpy as jnp
from jax import lax
from jax.experimental import pallas as pl
from jax.experimental.pallas import tpu as pltpu

KSIZE = 7
PAD = 3  # padding = 3 for kernel_size = 7 (matches the PyTorch module)
_MAX_UNROLL_CHANNELS = 32  # unroll the VALU running-max up to this channel tile


def _conv_matrix(w, H, W):
    """Build K (HW, HW) with K[q, p] = w[qi-pi+3, qj-pj+3] (zero outside band).

    (max_plane.flatten() @ K).reshape(H, W) == Conv2d(1,1,7,pad=3,bias=False)
    applied to max_plane (cross-correlation with zero padding).
    """
    HW = H * W
    idx = jnp.arange(HW)
    pi, pj = idx // W, idx % W
    di = pi[:, None] - pi[None, :] + PAD   # di[q, p] = qi - pi + 3
    dj = pj[:, None] - pj[None, :] + PAD
    valid = (di >= 0) & (di < KSIZE) & (dj >= 0) & (dj < KSIZE)
    taps = w[jnp.clip(di, 0, KSIZE - 1), jnp.clip(dj, 0, KSIZE - 1)]
    return jnp.where(valid, taps, 0.0).astype(jnp.float32)


def _spatial_attention_kernel(x_ref, k_hbm, o_ref, k_vmem, max_acc, k_sem):
    # x_ref:   (bt, c_t, HWp) VMEM  — one channel tile of bt batch elements
    # k_hbm:   (HWp, HWp)     HBM   — flattened conv matrix (manual DMA)
    # o_ref:   (bt, HWp)      VMEM  — sigmoid(conv(channel_max)), lane-dense
    # k_vmem:  (HWp, HWp)     VMEM scratch — single-buffered landing pad for K
    # max_acc: (bt, HWp) f32  VMEM scratch — running channel-max accumulator
    # k_sem:   DMA semaphore for the K copy
    c = pl.program_id(1)
    k_copy = pltpu.make_async_copy(k_hbm, k_vmem, k_sem)

    @pl.when(c == 0)
    def _init():
        # Kick off the K transfer now; it is only consumed at the last channel
        # step, so the entire channel-max reduction hides its latency and K is
        # never double-buffered by the auto-pipeline.
        k_copy.start()
        max_acc[...] = jnp.full_like(max_acc, -jnp.inf)

    # torch.max(x, dim=1): running max over channel tiles, f32 arithmetic.
    c_t = x_ref.shape[1]
    if c_t <= _MAX_UNROLL_CHANNELS:
        # Unrolled elementwise maximum over (bt, HWp) slabs: pure VALU work
        # (v6e/v7x only have 2 XLUs for cross-sublane reduces).
        for i in range(c_t):
            max_acc[...] = jnp.maximum(max_acc[...],
                                       x_ref[:, i, :].astype(jnp.float32))
    else:
        tile = x_ref[...].astype(jnp.float32)
        max_acc[...] = jnp.maximum(max_acc[...], jnp.max(tile, axis=1))

    @pl.when(c == pl.num_programs(1) - 1)
    def _finalize():
        k_copy.wait()
        # 7x7 conv with zero padding == one MXU matmul with the banded K.
        # Cast the LHS to K's dtype (bf16 path is exact here when x was bf16);
        # accumulation stays f32.
        conv = jnp.dot(max_acc[...].astype(k_vmem.dtype), k_vmem[...],
                       preferred_element_type=jnp.float32)      # (bt, HWp)
        o_ref[...] = jax.nn.sigmoid(conv).astype(o_ref.dtype)


def _vmem_capacity_bytes():
    try:
        return int(pltpu.get_tpu_info().vmem_capacity_bytes)
    except Exception:
        return 64 << 20  # conservative fallback (v7x per-core physical VMEM)


def _pick_batch_tile(B, max_bt=256):
    # Block second-to-last dims must be multiples of 8 or the full extent.
    if B % 8 != 0:
        return B
    cands = [d for d in range(8, B + 1, 8) if B % d == 0 and d <= max_bt]
    if not cands:
        return B
    # Keep >= 2 blocks on the leading "parallel" axis when possible so both
    # v7x TensorCores get work; otherwise take the largest tile.
    two = [d for d in cands if B // d >= 2]
    return max(two) if two else max(cands)


def _pick_channel_tile(C, bt, HWp, itemsize, block_budget):
    # Channel tile must divide C and be a multiple of 8 (or the full C).
    if C % 8 != 0:
        return C
    divs = [d for d in range(8, C + 1, 8) if C % d == 0]
    fit = [d for d in divs if bt * d * HWp * itemsize <= block_budget]
    return max(fit) if fit else min(divs)


def spatial_attention(x, w, *, compute_dtype=jnp.bfloat16):
    """x: (B, C, H, W) f32/bf16, w: (7, 7) f32 -> (B, 1, H, W) in x.dtype."""
    B, C, H, W = x.shape
    HW = H * W
    HWp = ((HW + 127) // 128) * 128         # lane-dense spatial length
    out_dtype = x.dtype

    # K is a pure weight/layout transform; store it in the compute dtype.
    k_mat = _conv_matrix(w.astype(jnp.float32), H, W)
    if HWp != HW:
        k_mat = jnp.pad(k_mat, ((0, HWp - HW), (0, HWp - HW)))
    k_mat = k_mat.astype(compute_dtype)

    # Lane-dense layout plumbing; feed activations in the (narrow) compute dtype.
    x_flat = x.reshape(B, C, HW).astype(compute_dtype)
    if HWp != HW:
        # Zero padding is safe: the padded K rows/cols are zero, so padded
        # lanes contribute nothing and padded outputs are cropped below.
        x_flat = jnp.pad(x_flat, ((0, 0), (0, 0), (0, HWp - HW)))

    x_itemsize = jnp.dtype(compute_dtype).itemsize
    out_itemsize = jnp.dtype(out_dtype).itemsize

    bt = _pick_batch_tile(B)

    # VMEM budget audit: single-buffered K + f32 max_acc + double-buffered out
    # are "fixed"; the rest of (half of) VMEM goes to the double-buffered x block.
    cap = min(_vmem_capacity_bytes(), 128 << 20)
    fixed = (HWp * HWp * x_itemsize            # K scratch (single buffer)
             + bt * HWp * 4                    # max_acc (f32)
             + 2 * bt * HWp * out_itemsize)    # double-buffered output block
    x_block_budget = max((cap // 2 - fixed) // 2, 1 << 20)
    c_t = _pick_channel_tile(C, bt, HWp, x_itemsize, x_block_budget)

    required = fixed + 2 * bt * c_t * HWp * x_itemsize
    vmem_limit = int(min(cap, max(32 << 20, 2 * required)))

    grid = (B // bt, C // c_t)

    out_flat = pl.pallas_call(
        _spatial_attention_kernel,
        out_shape=jax.ShapeDtypeStruct((B, HWp), out_dtype),
        grid=grid,
        in_specs=[
            pl.BlockSpec((bt, c_t, HWp), lambda b, c: (b, c, 0)),
            pl.BlockSpec(memory_space=pl.ANY),   # K stays in HBM; manual DMA
        ],
        out_specs=pl.BlockSpec((bt, HWp), lambda b, c: (b, 0)),
        scratch_shapes=[
            pltpu.VMEM((HWp, HWp), compute_dtype),   # single-buffered K
            pltpu.VMEM((bt, HWp), jnp.float32),      # running channel max
            pltpu.SemaphoreType.DMA,                 # K copy completion
        ],
        compiler_params=pltpu.CompilerParams(
            dimension_semantics=("parallel", "arbitrary"),
            vmem_limit_bytes=vmem_limit),
    )(x_flat, k_mat)

    return out_flat[:, :HW].reshape(B, 1, H, W)


def _reference(x, w):
    # Pure-JAX reference matching the PyTorch forward (f32 end to end).
    max_out = jnp.max(x, axis=1, keepdims=True)
    conv = lax.conv_general_dilated(
        max_out, w.reshape(1, 1, KSIZE, KSIZE),
        window_strides=(1, 1), padding="SAME",
        dimension_numbers=("NCHW", "OIHW", "NCHW"))
    return jax.nn.sigmoid(conv)


if __name__ == "__main__":
    key_x, key_w, key_x2 = jax.random.split(jax.random.PRNGKey(0), 3)

    # Conv2d(1, 1, 7, bias=False) weight, kaiming-uniform-like bound 1/sqrt(49)
    bound = 1.0 / 7.0
    w = jax.random.uniform(key_w, (KSIZE, KSIZE), dtype=jnp.float32,
                           minval=-bound, maxval=bound)

    # --- Test 1: lane-aligned toy shape, f32 compute path (tight check) ------
    B, C, H, W = 2, 4, 16, 16
    x = jax.random.normal(key_x, (B, C, H, W), dtype=jnp.float32)
    ref = _reference(x, w)

    out_f32 = jax.block_until_ready(
        spatial_attention(x, w, compute_dtype=jnp.float32))
    assert out_f32.shape == (B, 1, H, W)
    assert jnp.allclose(out_f32, ref, atol=1e-4, rtol=1e-4), "f32 path mismatch"

    # Default (fast) path: bf16 activations + bf16 K, f32 accumulation.
    out_bf16 = jax.block_until_ready(spatial_attention(x, w))
    assert out_bf16.shape == (B, 1, H, W)
    assert jnp.allclose(out_bf16, ref, atol=2e-2, rtol=2e-2), "bf16 path mismatch"

    # --- Test 2: non-128-multiple spatial plane exercises the padding path ---
    B2, C2, H2, W2 = 2, 3, 10, 12       # HW = 120 -> padded to 128 lanes
    x2 = jax.random.normal(key_x2, (B2, C2, H2, W2), dtype=jnp.float32)
    ref2 = _reference(x2, w)
    out2 = jax.block_until_ready(spatial_attention(x2, w))
    assert out2.shape == (B2, 1, H2, W2)
    assert jnp.allclose(out2, ref2, atol=2e-2, rtol=2e-2), "padded path mismatch"

    print("KERNEL_OK")
</pallas_src>

<mosaic_0001>
module attributes {stable_mosaic.version = 11 : i64} {
  func.func @_spatial_attention_kernel(%arg0: i32, %arg1: i32, %arg2: memref<2x4x256xf32, #tpu.memory_space<vmem>>, %arg3: memref<256x256xf32, #tpu.memory_space<any>>, %arg4: memref<2x256xf32, #tpu.memory_space<vmem>>, %arg5: memref<256x256xf32, #tpu.memory_space<vmem>>, %arg6: memref<2x256xf32, #tpu.memory_space<vmem>>, %arg7: memref<!tpu.dma_semaphore, #tpu.memory_space<semaphore_mem>>) attributes {dimension_semantics = [#tpu.dimension_semantics<parallel>, #tpu.dimension_semantics<arbitrary>], iteration_bounds = array<i64: 1, 1>, scalar_prefetch = 0 : i64, scratch_operands = 3 : i64, tpu.core_type = #tpu.core_type<tc>, window_params = [{transform_indices = @transform_0, window_bounds = array<i64: 2, 4, 256>}, {}, {transform_indices = @transform_2, window_bounds = array<i64: 2, 256>}]} {
    %c0_i32 = arith.constant 0 : i32
    %0 = arith.cmpi eq, %arg1, %c0_i32 : i32
    %1 = arith.extui %0 : i1 to i32
    %c0_i32_0 = arith.constant 0 : i32
    %2 = arith.cmpi ne, %1, %c0_i32_0 : i32
    scf.if %2 {
      tpu.enqueue_dma source(%arg3 : memref<256x256xf32, #tpu.memory_space<any>>) target(%arg5 : memref<256x256xf32, #tpu.memory_space<vmem>>) target_semaphore(%arg7 : memref<!tpu.dma_semaphore, #tpu.memory_space<semaphore_mem>>)
      %cst = arith.constant 0xFF800000 : f32
      %26 = vector.broadcast %cst : f32 to vector<2x256xf32>
      %c0_27 = arith.constant 0 : index
      %c0_28 = arith.constant 0 : index
      %27 = vector.load %arg6[%c0_27, %c0_28] : memref<2x256xf32, #tpu.memory_space<vmem>>, vector<2x256xf32>
      tpu.vector_store %arg6[%c0_27, %c0_28], %26 {strides = array<i32>} : memref<2x256xf32, #tpu.memory_space<vmem>>, vector<2x256xf32>,
    } else {
    }
    %c0 = arith.constant 0 : index
    %c0_1 = arith.constant 0 : index
    %3 = vector.load %arg6[%c0, %c0_1] : memref<2x256xf32, #tpu.memory_space<vmem>>, vector<2x256xf32>
    %c0_2 = arith.constant 0 : index
    %c0_3 = arith.constant 0 : index
    %c0_4 = arith.constant 0 : index
    %4 = vector.load %arg2[%c0_2, %c0_3, %c0_4] : memref<2x4x256xf32, #tpu.memory_space<vmem>>, vector<2x1x256xf32>
    %5 = vector.shape_cast %4 : vector<2x1x256xf32> to vector<2x256xf32>
    %6 = arith.maximumf %3, %5 : vector<2x256xf32>
    %c0_5 = arith.constant 0 : index
    %c0_6 = arith.constant 0 : index
    %7 = vector.load %arg6[%c0_5, %c0_6] : memref<2x256xf32, #tpu.memory_space<vmem>>, vector<2x256xf32>
    tpu.vector_store %arg6[%c0_5, %c0_6], %6 {strides = array<i32>} : memref<2x256xf32, #tpu.memory_space<vmem>>, vector<2x256xf32>,
    %c0_7 = arith.constant 0 : index
    %c0_8 = arith.constant 0 : index
    %8 = vector.load %arg6[%c0_7, %c0_8] : memref<2x256xf32, #tpu.memory_space<vmem>>, vector<2x256xf32>
    %c0_9 = arith.constant 0 : index
    %c1 = arith.constant 1 : index
    %c0_10 = arith.constant 0 : index
    %9 = vector.load %arg2[%c0_9, %c1, %c0_10] : memref<2x4x256xf32, #tpu.memory_space<vmem>>, vector<2x1x256xf32>
    %10 = vector.shape_cast %9 : vector<2x1x256xf32> to vector<2x256xf32>
    %11 = arith.maximumf %8, %10 : vector<2x256xf32>
    %c0_11 = arith.constant 0 : index
    %c0_12 = arith.constant 0 : index
    %12 = vector.load %arg6[%c0_11, %c0_12] : memref<2x256xf32, #tpu.memory_space<vmem>>, vector<2x256xf32>
    tpu.vector_store %arg6[%c0_11, %c0_12], %11 {strides = array<i32>} : memref<2x256xf32, #tpu.memory_space<vmem>>, vector<2x256xf32>,
    %c0_13 = arith.constant 0 : index
    %c0_14 = arith.constant 0 : index
    %13 = vector.load %arg6[%c0_13, %c0_14] : memref<2x256xf32, #tpu.memory_space<vmem>>, vector<2x256xf32>
    %c0_15 = arith.constant 0 : index
    %c2 = arith.constant 2 : index
    %c0_16 = arith.constant 0 : index
    %14 = vector.load %arg2[%c0_15, %c2, %c0_16] : memref<2x4x256xf32, #tpu.memory_space<vmem>>, vector<2x1x256xf32>
    %15 = vector.shape_cast %14 : vector<2x1x256xf32> to vector<2x256xf32>
    %16 = arith.maximumf %13, %15 : vector<2x256xf32>
    %c0_17 = arith.constant 0 : index
    %c0_18 = arith.constant 0 : index
    %17 = vector.load %arg6[%c0_17, %c0_18] : memref<2x256xf32, #tpu.memory_space<vmem>>, vector<2x256xf32>
    tpu.vector_store %arg6[%c0_17, %c0_18], %16 {strides = array<i32>} : memref<2x256xf32, #tpu.memory_space<vmem>>, vector<2x256xf32>,
    %c0_19 = arith.constant 0 : index
    %c0_20 = arith.constant 0 : index
    %18 = vector.load %arg6[%c0_19, %c0_20] : memref<2x256xf32, #tpu.memory_space<vmem>>, vector<2x256xf32>
    %c0_21 = arith.constant 0 : index
    %c3 = arith.constant 3 : index
    %c0_22 = arith.constant 0 : index
    %19 = vector.load %arg2[%c0_21, %c3, %c0_22] : memref<2x4x256xf32, #tpu.memory_space<vmem>>, vector<2x1x256xf32>
    %20 = vector.shape_cast %19 : vector<2x1x256xf32> to vector<2x256xf32>
    %21 = arith.maximumf %18, %20 : vector<2x256xf32>
    %c0_23 = arith.constant 0 : index
    %c0_24 = arith.constant 0 : index
    %22 = vector.load %arg6[%c0_23, %c0_24] : memref<2x256xf32, #tpu.memory_space<vmem>>, vector<2x256xf32>
    tpu.vector_store %arg6[%c0_23, %c0_24], %21 {strides = array<i32>} : memref<2x256xf32, #tpu.memory_space<vmem>>, vector<2x256xf32>,
    %c0_i32_25 = arith.constant 0 : i32
    %23 = arith.cmpi eq, %arg1, %c0_i32_25 : i32
    %24 = arith.extui %23 : i1 to i32
    %c0_i32_26 = arith.constant 0 : i32
    %25 = arith.cmpi ne, %24, %c0_i32_26 : i32
    scf.if %25 {
      tpu.wait_dma2 semaphore(%arg7 : memref<!tpu.dma_semaphore, #tpu.memory_space<semaphore_mem>>) src(%arg3 : memref<256x256xf32, #tpu.memory_space<any>>) dst(%arg5 : memref<256x256xf32, #tpu.memory_space<vmem>>)
      %c0_27 = arith.constant 0 : index
      %c0_28 = arith.constant 0 : index
      %26 = vector.load %arg6[%c0_27, %c0_28] : memref<2x256xf32, #tpu.memory_space<vmem>>, vector<2x256xf32>
      %c0_29 = arith.constant 0 : index
      %c0_30 = arith.constant 0 : index
      %27 = vector.load %arg5[%c0_29, %c0_30] : memref<256x256xf32, #tpu.memory_space<vmem>>, vector<256x256xf32>
      %cst = arith.constant dense<0.000000e+00> : vector<2x256xf32>
      %28 = tpu.matmul %26, %27, %cst {dimension_numbers = #tpu.dot_dimension_numbers<[1], [0], [0], [1], [0, 0, 1, 1], [], []>} : vector<2x256xf32>, vector<256x256xf32>, vector<2x256xf32> -> vector<2x256xf32>
      %29 = arith.negf %28 : vector<2x256xf32>
      %30 = math.exp %29 : vector<2x256xf32>
      %cst_31 = arith.constant 1.000000e+00 : f32
      %31 = vector.broadcast %cst_31 : f32 to vector<2x256xf32>
      %32 = arith.addf %31, %30 : vector<2x256xf32>
      %33 = arith.divf %31, %32 : vector<2x256xf32>
      %c0_32 = arith.constant 0 : index
      %c0_33 = arith.constant 0 : index
      %34 = vector.load %arg4[%c0_32, %c0_33] : memref<2x256xf32, #tpu.memory_space<vmem>>, vector<2x256xf32>
      tpu.vector_store %arg4[%c0_32, %c0_33], %33 {strides = array<i32>} : memref<2x256xf32, #tpu.memory_space<vmem>>, vector<2x256xf32>,
    } else {
    }
    return
  }
  func.func @transform_0(%arg0: i32, %arg1: i32) -> (i32, i32, i32) {
    %c0_i32 = arith.constant 0 : i32
    %c0_i32_0 = arith.constant 0 : i32
    return %arg0, %arg1, %c0_i32 : i32, i32, i32
  }
  func.func @transform_2(%arg0: i32, %arg1: i32) -> (i32, i32) {
    %c0_i32 = arith.constant 0 : i32
    %c0_i32_0 = arith.constant 0 : i32
    return %arg0, %c0_i32 : i32, i32
  }
}

</mosaic_0001>

<bundles_post_ra>
// kernel: tpu_custom_call.1
= control target key start
LH: loop header
LB: loop body
LE: loop exit
PB: predicated region body
PF: predicated region fallthrough
CT: control target
= control target key end

     0   :  { %7 = vsyncpa [#allocation6], 0  ;;  %s432_s0 = inlined_call_operand.hbm [shape: f32[2,4,256], index: 0, kind: input, shape index: {}]   ;;  %s433_s1 = inlined_call_operand.hbm [shape: f32[256,256], index: 1, kind: input, shape index: {}]   ;;  %s434_s2 = inlined_call_operand.hbm [shape: f32[2,256], index: 2, kind: output, shape index: {}]  }
   0x1   :  { %8 = vsyncpa [#allocation7], 0  ;;  %s396_s9 = smov [#allocation5]  }
   0x2   :  { %s14_s10 = sshll.u32 %s396_s9, 4  ;;  %s15_s10 = int_to_ptr.vmem [resolvable:$true] %s14_s10 }
   0x3   :  { %s338_s11 = scalar_lea.vmem %s15_s10, 256  ;;  %p343_p1 = scmp.lt.s32.totalorder %s15_s10, %s15_s10 }
   0x4   :  { %p339_p0 = scmp.ne.s32.totalorder %s15_s10, %s338_s11  ;;  %p344_p2 = scmp.lt.s32.totalorder %s338_s11, %s338_s11 }
   0x6   :  { %p345_p3 = por %p344_p2, %p343_p1 }
   0x8   :  { %p346_p4 = pnand %p345_p3, %p339_p0 }
   0xa   :  { %349 = shalt.err (!%p346_p4)
}
   0xb   :  { %s397_s12 = smov 128   ;;  %s398_s13 = smov 8  }
   0xc   :  { %20 = dma.hbm_to_vmem [thread:$0]  %s432_s0, 256, %s15_s10, [#allocation6], %s397_s12, %s397_s12, %s398_s13  }
   0xd   :  { %390 = dma.done.wait [#allocation6], 256  }
   0xe   :  { %391 = vsyncadd [#allocation6], 4294967040  ;;  %v50_v0 = vlaneseq  ;;  %v399_v1 = vmov -inf   ;;  %v400_v2 = vmov 1935823168   ;;  %s401_s16 = smov [#allocation2]  }
   0xf   :  { %39 = vst [vmem:[#allocation3] sm:$0xf] %v399_v1  ;;  %v48_v3 = vunpack.c.l.s4 %v400_v2  ;;  %s35_s17 = sshll.u32 %s401_s16, 4  ;;  %s36_s17 = int_to_ptr.vmem [resolvable:$true] %s35_s17 }
  0x10   :  { %v51_v4 = vshrl.u32 %v50_v0, 7  ;;  %s358_s18 = scalar_lea.vmem %s36_s17, 8192  ;;  %p363_p6 = scmp.lt.s32.totalorder %s36_s17, %s36_s17 }
  0x11   :  { %v49_v5 = vunpack.c.0.s8 %v48_v3  ;;  %p359_p5 = scmp.ne.s32.totalorder %s36_s17, %s358_s18  ;;  %p364_p7 = scmp.lt.s32.totalorder %s358_s18, %s358_s18 }
  0x13   :  { %p365_p8 = por %p364_p7, %p363_p6 }
  0x15   :  { %p366_p9 = pnand %p365_p8, %p359_p5 }
  0x17   :  { %369 = shalt.err (!%p366_p9)  }
  0x18   :  { %38 = dma.hbm_to_vmem [thread:$0]  %s433_s1, 8192, %s36_s17, [#allocation4]  ;;  %v52_v6 = vsub.s32 %v49_v5, %v51_v4  ;;  %v41_v7 = vld [vmem:[#allocation5] ss:$4 sm:$0x3] }
  0x19   :  { %v43_v8 = vld [vmem:[#allocation5 + $0x8] ss:$4 sm:$0x3]  ;;  %v40_v10 = vld [vmem:[#allocation3] sm:$0xf] }
  0x1a   :  { %v46_v9 = vcombine.low %v41_v7, %v43_v8  ;;  %v59_v12 = vld [vmem:[#allocation5 + $0x1] ss:$4 sm:$0x3]  ;;  %v61_v13 = vld [vmem:[#allocation5 + $0x9] ss:$4 sm:$0x3] }
  0x1b   :  { %v64_v15 = vcombine.low %v59_v12, %v61_v13  ;;  %v77_v17 = vld [vmem:[#allocation5 + $0x2] ss:$4 sm:$0x3]  ;;  %v79_v19 = vld [vmem:[#allocation5 + $0xa] ss:$4 sm:$0x3] }
  0x1c   :  { %v53_v11 = vrot.slane %v46_v9, %v52_v6  ;;  %v82_v21 = vcombine.low %v77_v17, %v79_v19  ;;  %v95_v23 = vld [vmem:[#allocation5 + $0x3] ss:$4 sm:$0x3]  ;;  %v97_v25 = vld [vmem:[#allocation5 + $0xb] ss:$4 sm:$0x3] }
  0x1d   :  { %v71_v16 = vrot.slane %v64_v15, %v52_v6  ;;  %v100_v27 = vcombine.low %v95_v23, %v97_v25 }
  0x1e   :  { %v55_v14 = vmax.f32 %v40_v10, %v53_v11  ;;  %v89_v22 = vrot.slane %v82_v21, %v52_v6 }
  0x1f   :  { %v107_v28 = vrot.slane %v100_v27, %v52_v6 }
  0x20   :  { %56 = vst [vmem:[#allocation3] sm:$0xf] %v55_v14 }
  0x27   :  { %v57_v18 = vld [vmem:[#allocation3] sm:$0xf] }
  0x28   :  { %v73_v20 = vmax.f32 %v57_v18, %v71_v16 }
  0x2a   :  { %74 = vst [vmem:[#allocation3] sm:$0xf] %v73_v20 }
  0x31   :  { %v75_v24 = vld [vmem:[#allocation3] sm:$0xf] }
  0x32   :  { %v91_v26 = vmax.f32 %v75_v24, %v89_v22 }
  0x34   :  { %92 = vst [vmem:[#allocation3] sm:$0xf] %v91_v26 }
  0x3b   :  { %v93_v29 = vld [vmem:[#allocation3] sm:$0xf] }
  0x3c   :  { %v109_v30 = vmax.f32 %v93_v29, %v107_v28 }
  0x3e   :  { %110 = vst [vmem:[#allocation3] sm:$0xf] %v109_v30 }
  0x3f   :  { %392 = dma.done.wait [#allocation4], 8192 }
  0x40   :  { %393 = vsyncadd [#allocation4], 4294959104  ;;  %v150_v31 = vld [vmem:[#allocation2 + $0xf8] sm:$0xff]  ;;  %v149_v32 = vld [vmem:[#allocation2 + $0xf0] sm:$0xff]  ;;  %s402_s1 = smov [#allocation8]  }
  0x41   :  { %v148_v33 = vld [vmem:[#allocation2 + $0xe8] sm:$0xff]  ;;  %194 = vmatprep.subr.mxu0 %v150_v31  ;;  %v147_v34 = vld [vmem:[#allocation2 + $0xe0] sm:$0xff]  ;;  %v146_v35 = vld [vmem:[#allocation2 + $0xd8] sm:$0xff]  ;;  %s295_s20 = sshll.u32 %s402_s1, 4  ;;  %s296_s20 = int_to_ptr.vmem [resolvable:$true] %s295_s20 }
  0x42   :  { %195 = vmatpush1.msra.mxu0 %v149_v32  ;;  %v145_v36 = vld [vmem:[#allocation2 + $0xd0] sm:$0xff]  ;;  %v144_v37 = vld [vmem:[#allocation2 + $0xc8] sm:$0xff]  ;;  %v143_v38 = vld [vmem:[#allocation2 + $0xc0] sm:$0xff]  ;;  %s370_s21 = scalar_lea.vmem %s296_s20, 64  ;;  %p375_p11 = scmp.lt.s32.totalorder %s296_s20, %s296_s20 }
  0x43   :  { %196 = vmatprep.subr.mxu0 %v148_v33  ;;  %v142_v39 = vld [vmem:[#allocation2 + $0xb8] sm:$0xff]  ;;  %v141_v40 = vld [vmem:[#allocation2 + $0xb0] sm:$0xff]  ;;  %v140_v41 = vld [vmem:[#allocation2 + $0xa8] sm:$0xff]  ;;  %p371_p10 = scmp.ne.s32.totalorder %s296_s20, %s370_s21  ;;  %p376_p12 = scmp.lt.s32.totalorder %s370_s21, %s370_s21 }
  0x44   :  { %197 = vmatpush1.msra.mxu0 %v147_v34  ;;  %v139_v42 = vld [vmem:[#allocation2 + $0xa0] sm:$0xff]  ;;  %v138_v43 = vld [vmem:[#allocation2 + $0x98] sm:$0xff]  ;;  %v137_v44 = vld [vmem:[#allocation2 + $0x90] sm:$0xff] }
  0x45   :  { %198 = vmatprep.subr.mxu0 %v146_v35  ;;  %v136_v45 = vld [vmem:[#allocation2 + $0x88] sm:$0xff]  ;;  %v135_v46 = vld [vmem:[#allocation2 + $0x80] sm:$0xff]  ;;  %v134_v47 = vld [vmem:[#allocation2 + $0x78] sm:$0xff]  ;;  %p377_p13 = por %p376_p12, %p375_p11 }
  0x46   :  { %199 = vmatpush1.msra.mxu0 %v145_v36  ;;  %v133_v48 = vld [vmem:[#allocation2 + $0x70] sm:$0xff]  ;;  %v132_v49 = vld [vmem:[#allocation2 + $0x68] sm:$0xff]  ;;  %v131_v50 = vld [vmem:[#allocation2 + $0x60] sm:$0xff] }
  0x47   :  { %200 = vmatprep.subr.mxu0 %v144_v37  ;;  %v130_v51 = vld [vmem:[#allocation2 + $0x58] sm:$0xff]  ;;  %v129_v52 = vld [vmem:[#allocation2 + $0x50] sm:$0xff]  ;;  %v128_v53 = vld [vmem:[#allocation2 + $0x48] sm:$0xff]  ;;  %p378_p0 = pnand %p377_p13, %p371_p10 }
  0x48   :  { %201 = vmatpush1.msra.mxu0 %v143_v38  ;;  %v127_v54 = vld [vmem:[#allocation2 + $0x40] sm:$0xff]  ;;  %v126_v56 = vld [vmem:[#allocation2 + $0x38] sm:$0xff]  ;;  %v125_v58 = vld [vmem:[#allocation2 + $0x30] sm:$0xff] }
  0x49   :  { %202 = vmatprep.subr.mxu0 %v142_v39  ;;  %v424_v55 = vld.sshfl [vmem:[#allocation3] sm:$0x33 pattern:$0x76325410]  ;;  %v124_v59 = vld [vmem:[#allocation2 + $0x28] sm:$0xff]  ;;  %v122_v61 = vld [vmem:[#allocation2 + $0x18] sm:$0xff] }
  0x4a   :  { %203 = vmatpush1.msra.mxu0 %v141_v40  ;;  %v191_v57 = vcombine.high %v424_v55, %v424_v55  ;;  %v123_v60 = vld [vmem:[#allocation2 + $0x20] sm:$0xff]  ;;  %v121_v62 = vld [vmem:[#allocation2 + $0x10] sm:$0xff]  ;;  %v120_v63 = vld [vmem:[#allocation2 + $0x8] sm:$0xff] }
  0x4b   :  { %204 = vmatprep.subr.mxu0 %v140_v41  ;;  %v119_v0 = vld [vmem:[#allocation2] sm:$0xff]  ;;  %v182_v1 = vld [vmem:[#allocation2 + $0x1f8] sm:$0xff]  ;;  %v181_v2 = vld [vmem:[#allocation2 + $0x1f0] sm:$0xff] }
  0x4c   :  { %205 = vmatpush1.msra.mxu0 %v139_v42  ;;  %258 = vmatprep.mubr.f32.mxu0 %v191_v57  ;;  %v180_v3 = vld [vmem:[#allocation2 + $0x1e8] sm:$0xff]  ;;  %v179_v4 = vld [vmem:[#allocation2 + $0x1e0] sm:$0xff]  ;;  %v178_v5 = vld [vmem:[#allocation2 + $0x1d8] sm:$0xff] }
  0x4d   :  { %206 = vmatprep.subr.mxu0 %v138_v43  ;;  %v177_v6 = vld [vmem:[#allocation2 + $0x1d0] sm:$0xff]  ;;  %v176_v7 = vld [vmem:[#allocation2 + $0x1c8] sm:$0xff]  ;;  %v175_v8 = vld [vmem:[#allocation2 + $0x1c0] sm:$0xff] }
  0x4e   :  { %207 = vmatpush1.msra.mxu0 %v137_v44  ;;  %v174_v9 = vld [vmem:[#allocation2 + $0x1b8] sm:$0xff]  ;;  %v173_v10 = vld [vmem:[#allocation2 + $0x1b0] sm:$0xff]  ;;  %v172_v11 = vld [vmem:[#allocation2 + $0x1a8] sm:$0xff] }
  0x4f   :  { %208 = vmatprep.subr.mxu0 %v136_v45  ;;  %v171_v12 = vld [vmem:[#allocation2 + $0x1a0] sm:$0xff]  ;;  %v170_v13 = vld [vmem:[#allocation2 + $0x198] sm:$0xff]  ;;  %v169_v14 = vld [vmem:[#allocation2 + $0x190] sm:$0xff] }
  0x50   :  { %209 = vmatpush1.msra.mxu0 %v135_v46  ;;  %v168_v15 = vld [vmem:[#allocation2 + $0x188] sm:$0xff]  ;;  %v167_v16 = vld [vmem:[#allocation2 + $0x180] sm:$0xff]  ;;  %v166_v17 = vld [vmem:[#allocation2 + $0x178] sm:$0xff] }
  0x51   :  { %210 = vmatprep.subr.mxu0 %v134_v47  ;;  %v165_v18 = vld [vmem:[#allocation2 + $0x170] sm:$0xff]  ;;  %v164_v19 = vld [vmem:[#allocation2 + $0x168] sm:$0xff]  ;;  %v163_v20 = vld [vmem:[#allocation2 + $0x160] sm:$0xff] }
  0x52   :  { %211 = vmatpush1.msra.mxu0 %v133_v48  ;;  %v162_v21 = vld [vmem:[#allocation2 + $0x158] sm:$0xff]  ;;  %v161_v22 = vld [vmem:[#allocation2 + $0x150] sm:$0xff]  ;;  %v160_v23 = vld [vmem:[#allocation2 + $0x148] sm:$0xff] }
  0x53   :  { %212 = vmatprep.subr.mxu0 %v132_v49  ;;  %v159_v24 = vld [vmem:[#allocation2 + $0x140] sm:$0xff]  ;;  %v158_v25 = vld [vmem:[#allocation2 + $0x138] sm:$0xff]  ;;  %v157_v26 = vld [vmem:[#allocation2 + $0x130] sm:$0xff] }
  0x54   :  { %213 = vmatpush1.msra.mxu0 %v131_v50  ;;  %v156_v27 = vld [vmem:[#allocation2 + $0x128] sm:$0xff]  ;;  %v155_v28 = vld [vmem:[#allocation2 + $0x120] sm:$0xff]  ;;  %v154_v29 = vld [vmem:[#allocation2 + $0x118] sm:$0xff] }
  0x55   :  { %214 = vmatprep.subr.mxu0 %v130_v51  ;;  %v153_v30 = vld [vmem:[#allocation2 + $0x110] sm:$0xff]  ;;  %v152_v31 = vld [vmem:[#allocation2 + $0x108] sm:$0xff]  ;;  %v151_v32 = vld [vmem:[#allocation2 + $0x100] sm:$0xff] }
  0x56   :  { %215 = vmatpush1.msra.mxu0 %v129_v52 }
  0x57   :  { %216 = vmatprep.subr.mxu0 %v128_v53 }
  0x58   :  { %217 = vmatpush1.msra.mxu0 %v127_v54 }
  0x59   :  { %218 = vmatprep.subr.mxu0 %v126_v56 }
  0x5a   :  { %219 = vmatpush1.msra.mxu0 %v125_v58 }
  0x5b   :  { %220 = vmatprep.subr.mxu0 %v124_v59 }
  0x5c   :  { %221 = vmatpush1.msra.mxu0 %v123_v60 }
  0x5d   :  { %222 = vmatprep.subr.mxu0 %v122_v61 }
  0x5e   :  { %223 = vmatpush1.msra.mxu0 %v121_v62 }
  0x5f   :  { %224 = vmatprep.subr.mxu0 %v120_v63 }
  0x60   :  { %225 = vmatpush1.msra.mxu0 %v119_v0 }
  0x61   :  { %226 = vmatprep.subr.mxu0 %v182_v1 }
  0x62   :  { %227 = vmatpush2.msra.mxu0 %v181_v2 }
  0x63   :  { %228 = vmatprep.subr.mxu0 %v180_v3 }
  0x64   :  { %229 = vmatpush2.msra.mxu0 %v179_v4 }
  0x65   :  { %230 = vmatprep.subr.mxu0 %v178_v5 }
  0x66   :  { %231 = vmatpush2.msra.mxu0 %v177_v6 }
  0x67   :  { %232 = vmatprep.subr.mxu0 %v176_v7 }
  0x68   :  { %233 = vmatpush2.msra.mxu0 %v175_v8 }
  0x69   :  { %234 = vmatprep.subr.mxu0 %v174_v9 }
  0x6a   :  { %235 = vmatpush2.msra.mxu0 %v173_v10 }
  0x6b   :  { %236 = vmatprep.subr.mxu0 %v172_v11 }
  0x6c   :  { %237 = vmatpush2.msra.mxu0 %v171_v12 }
  0x6d   :  { %238 = vmatprep.subr.mxu0 %v170_v13 }
  0x6e   :  { %239 = vmatpush2.msra.mxu0 %v169_v14 }
  0x6f   :  { %240 = vmatprep.subr.mxu0 %v168_v15 }
  0x70   :  { %241 = vmatpush2.msra.mxu0 %v167_v16 }
  0x71   :  { %242 = vmatprep.subr.mxu0 %v166_v17 }
  0x72   :  { %243 = vmatpush2.msra.mxu0 %v165_v18 }
  0x73   :  { %244 = vmatprep.subr.mxu0 %v164_v19 }
  0x74   :  { %245 = vmatpush2.msra.mxu0 %v163_v20 }
  0x75   :  { %246 = vmatprep.subr.mxu0 %v162_v21 }
  0x76   :  { %247 = vmatpush2.msra.mxu0 %v161_v22 }
  0x77   :  { %248 = vmatprep.subr.mxu0 %v160_v23 }
  0x78   :  { %249 = vmatpush2.msra.mxu0 %v159_v24 }
  0x79   :  { %250 = vmatprep.subr.mxu0 %v158_v25 }
  0x7a   :  { %251 = vmatpush2.msra.mxu0 %v157_v26 }
  0x7b   :  { %252 = vmatprep.subr.mxu0 %v156_v27 }
  0x7c   :  { %253 = vmatpush2.msra.mxu0 %v155_v28 }
  0x7d   :  { %254 = vmatprep.subr.mxu0 %v154_v29 }
  0x7e   :  { %255 = vmatpush2.msra.mxu0 %v153_v30 }
  0x7f   :  { %256 = vmatprep.subr.mxu0 %v152_v31 }
  0x80   :  { %257 = vmatpush2.msra.mxu0 %v151_v32 }
  0x81   :  { %259 = vmatmul.mubr.f32.vlgmr.msra.gmra.mxu0 %v424_v55 }
 0x141   :  { %v260_v33 = vpop.f32.mrf.mxu0 }
 0x142   :  { %v311_v34 = vmul.f32 -1.442695, %v260_v33 }
 0x143   :  { %v262_v35 = vpop.f32.mrf.mxu0 }
 0x144   :  { %322 = vpow2.f32 %v311_v34  ;;  %v312_v36 = vmul.f32 -1.442695, %v262_v35 }
 0x146   :  { %324 = vpow2.f32 %v312_v36 }
 0x151   :  { %v323_v37 = vpop.eup %322 }
 0x152   :  { %v271_v38 = vadd.f32 1.0, %v323_v37 }
 0x153   :  { %v325_v39 = vpop.eup %324 }
 0x154   :  { %v272_v40 = vadd.f32 1.0, %v325_v39  ;;  %326 = vrcp.f32 %v271_v38 }
 0x156   :  { %328 = vrcp.f32 %v272_v40 }
 0x161   :  { %v327_v41 = vpop.eup %326 }
 0x163   :  { %v329_v42 = vpop.eup %328 }
 0x164   :  { %v279_v43 = vcombine.low %v327_v41, %v329_v42 }
 0x166   :  { %313 = vst.sshfl [vmem:[#allocation8] sm:$0x33 pattern:$0x76325410] %v279_v43 }
 0x167   :  { %381 = shalt.err (!%p378_p0)
}
 0x168   :  { %298 = dma.vmem_to_hbm [thread:$0]  %s296_s20, 64, %s434_s2, [#allocation7]  }
 0x169   :  { %394 = dma.done.wait [#allocation7], 64  }
 0x16a   :  { %395 = vsyncadd [#allocation7], 4294967232 }
 0x16b   :  { %302 = vsyncpa [#allocation6], 1 }
 0x16c   :  { %303 = vsyncpa [#allocation7], 1 }
 0x16d   :  { %304 = vsyncmov [#allocation4] }
 0x170   :  { %s305_s24 = vpop.sfrf %304 }
 0x171   :  { %p314_p1 = scmp.ne.s32.totalorder %s305_s24, 0 }
 0x173   :  { %309 = shalt.err (%p314_p1)  }

</bundles_post_ra>
